<compile_context>
chip_gen: v7x
topology: tpu7x:2x2x1
jax: 0.10.0
libtpu: 0.0.40
codegen_flags: <defaults>
</compile_context>

<pallas_src>
import functools

import jax
import jax.numpy as jnp
from jax.experimental import pallas as pl
from jax.experimental.pallas import tpu as pltpu

LANE = 128
SUBLANE = 8
_WIDTH_CANDIDATES = (4096, 2048, 1024, 512, 256, 128)
_VMEM_TILE_BUDGET = 40 * 1024 * 1024   # target estimated working set per step
_VMEM_LIMIT_BYTES = 48 * 1024 * 1024   # scoped-VMEM limit (safe on v5e..v7x)
_MIN_GRID_STEPS = 4                    # >= 2*num_TCs on v7x; harmless elsewhere


# ------------------------------ kernels --------------------------------------


def _ce_elem_kernel(p_ref, t_ref, o_ref, *, eps):
    """Elementwise -t * log(p + eps) on one (block_rows, width) tile.

    If the last grid block is ragged, the rows past the array contain stale
    VMEM; they may evaluate to NaN/Inf but are never written back to HBM.
    """
    p = p_ref[...].astype(jnp.float32)
    t = t_ref[...].astype(jnp.float32)
    o_ref[...] = (-t * jnp.log(p + eps)).astype(o_ref.dtype)


def _ce_psum_kernel(p_ref, t_ref, psum_ref, *, eps, rows, tr):
    """Fold one (tr, width) tile into an (8, width) f32 partial sum.

    A ragged last block (rows % tr != 0) is masked with a static iota compare
    so stale VMEM rows contribute exactly zero.
    """
    width = p_ref.shape[1]
    p = p_ref[...].astype(jnp.float32)
    t = t_ref[...].astype(jnp.float32)
    ce = -t * jnp.log(p + eps)                       # (tr, width) f32

    def fold(x):
        # (tr, width) -> (8, width): aligned 8-row chunk adds (pure VALU,
        # tile-aligned slices, no cross-sublane XLU reduce).  The store of the
        # (8, width) result is a full-sublane unmasked vst.
        acc = x[0:SUBLANE, :]
        for g in range(1, tr // SUBLANE):
            acc = acc + x[g * SUBLANE:(g + 1) * SUBLANE, :]
        return acc

    if rows % tr:                                    # static: ragged last block
        valid = rows % tr                            # valid rows in last block
        i = pl.program_id(0)
        last = pl.num_programs(0) - 1

        @pl.when(i == last)
        def _():
            ridx = jax.lax.broadcasted_iota(jnp.int32, (tr, width), 0)
            psum_ref[0] = fold(jnp.where(ridx < valid, ce, 0.0))

        @pl.when(i != last)
        def _():
            psum_ref[0] = fold(ce)
    else:
        psum_ref[0] = fold(ce)


# ------------------------------ helpers --------------------------------------


def _round_up(x, m):
    return ((x + m - 1) // m) * m


def _pick_width(n):
    """Largest lane-dense width (multiple of 128) dividing n, preferring
    widths that leave at least 8 rows of sublane work."""
    best = None
    for w in _WIDTH_CANDIDATES:
        if n % w == 0:
            if best is None:
                best = w
            if n // w >= SUBLANE:
                return w
    return best


def _as_2d(prob, target):
    """Copy-free 2-D view of both tensors.  Never pads, never concatenates."""
    n = prob.size
    w = _pick_width(n)
    if w is not None:
        return prob.reshape(n // w, w), target.reshape(n // w, w)
    # numel not a multiple of 128: keep the original contiguous last dim as the
    # lane axis (free reshape).  Correct for any shape; lane-padded in VMEM.
    # TODO(synk): a >1M-element unaligned last dim would need lane tiling too;
    # not expected for NCHW probability maps.
    c = prob.shape[-1] if prob.ndim >= 2 else n
    return prob.reshape(n // c, c), target.reshape(n // c, c)


def _choose_block_rows(rows, width, in_itemsize, out_itemsize, block_rows=None):
    """Rows per tile from a VMEM-byte budget (dtype-aware), >= _MIN_GRID_STEPS
    grid steps when possible, rounded to the sublane packing granularity."""
    sub = SUBLANE * max(1, 4 // max(1, in_itemsize))   # 8 f32 / 16 bf16 / 32 i8
    lanes = _round_up(width, LANE)                     # VMEM rows are lane-padded
    if block_rows is None:
        # Per-row bytes: 2 inputs x 2 pipeline buffers, output x 2 buffers
        # (elementwise path only), plus ~4 f32 temporaries inside the kernel.
        per_row = lanes * (4 * in_itemsize + 2 * out_itemsize + 4 * 4)
        block_rows = max(1, _VMEM_TILE_BUDGET // per_row)
        block_rows = min(block_rows, pl.cdiv(rows, _MIN_GRID_STEPS))
    block_rows = max(sub, (block_rows // sub) * sub)
    return min(block_rows, _round_up(rows, sub))


# ------------------------------ public API ------------------------------------


def simplex_cross_entropy_loss(prob, target, reduction="mean", eps=1e-16,
                               block_rows=None):
    assert reduction in ("mean", "sum", "none"), reduction
    assert prob.shape == target.shape
    # TODO(synk): the reference module's simplex()/requires_grad assertions are
    # host-side debug checks and are intentionally not reproduced in-kernel.

    orig_shape = prob.shape
    n = prob.size
    out_dtype = jnp.result_type(prob.dtype, target.dtype)
    eps = float(eps)

    p2d, t2d = _as_2d(prob, target)
    rows, width = p2d.shape
    in_itemsize = max(jnp.dtype(prob.dtype).itemsize,
                      jnp.dtype(target.dtype).itemsize)
    out_itemsize = jnp.dtype(out_dtype).itemsize if reduction == "none" else 0
    tr = _choose_block_rows(rows, width, in_itemsize, out_itemsize, block_rows)
    grid = (pl.cdiv(rows, tr),)

    in_specs = [pl.BlockSpec((tr, width), lambda i: (i, 0)),
                pl.BlockSpec((tr, width), lambda i: (i, 0))]
    params = pltpu.CompilerParams(dimension_semantics=("parallel",),
                                  vmem_limit_bytes=_VMEM_LIMIT_BYTES)

    if reduction == "none":
        out2d = pl.pallas_call(
            functools.partial(_ce_elem_kernel, eps=eps),
            out_shape=jax.ShapeDtypeStruct((rows, width), out_dtype),
            grid_spec=pltpu.PrefetchScalarGridSpec(
                num_scalar_prefetch=0,
                grid=grid,
                in_specs=in_specs,
                out_specs=pl.BlockSpec((tr, width), lambda i: (i, 0)),
            ),
            compiler_params=params,
        )(p2d, t2d)
        return out2d.reshape(orig_shape)

    # 'sum' / 'mean': per-block (8, width) f32 partials, one tiny XLA reduce.
    num_blocks = grid[0]
    psums = pl.pallas_call(
        functools.partial(_ce_psum_kernel, eps=eps, rows=rows, tr=tr),
        out_shape=jax.ShapeDtypeStruct((num_blocks, SUBLANE, width),
                                       jnp.float32),
        grid_spec=pltpu.PrefetchScalarGridSpec(
            num_scalar_prefetch=0,
            grid=grid,
            in_specs=in_specs,
            out_specs=pl.BlockSpec((1, SUBLANE, width), lambda i: (i, 0, 0)),
        ),
        compiler_params=params,
    )(p2d, t2d)
    total = jnp.sum(psums, dtype=jnp.float32)
    if reduction == "mean":
        total = total / jnp.float32(n)
    return total.astype(out_dtype)


class SimplexCrossEntropyLoss:
    """Thin stateful wrapper mirroring the PyTorch module's interface."""

    def __init__(self, reduction="mean", eps=1e-16):
        assert reduction in ("mean", "sum", "none"), reduction
        self._reduction = reduction
        self._eps = eps

    def __call__(self, prob, target, **kwargs):
        return simplex_cross_entropy_loss(prob, target, self._reduction,
                                          self._eps)


# ------------------------------ demo / check ----------------------------------

if __name__ == "__main__":
    root = jax.random.PRNGKey(0)
    keys = jax.random.split(root, 8)
    eps = 1e-16

    def make_simplex(key, shape, dtype=jnp.float32):
        logits = jax.random.normal(key, shape, jnp.float32)
        return jax.nn.softmax(logits, axis=1).astype(dtype)   # simplex along C

    def ref_ce(p, t):
        return -t.astype(jnp.float32) * jnp.log(p.astype(jnp.float32) + eps)

    # Case 1: canonical small NCHW, all reductions.
    prob = make_simplex(keys[0], (2, 4, 16, 16))
    target = make_simplex(keys[1], (2, 4, 16, 16))
    ce = ref_ce(prob, target)
    loss_mean = jax.block_until_ready(
        simplex_cross_entropy_loss(prob, target, "mean", eps))
    loss_sum = jax.block_until_ready(
        simplex_cross_entropy_loss(prob, target, "sum", eps))
    loss_none = jax.block_until_ready(
        simplex_cross_entropy_loss(prob, target, "none", eps))
    assert jnp.allclose(loss_mean, jnp.mean(ce), rtol=1e-5, atol=1e-6)
    assert jnp.allclose(loss_sum, jnp.sum(ce), rtol=1e-5, atol=1e-3)
    assert loss_none.shape == prob.shape
    assert jnp.allclose(loss_none, ce, rtol=1e-5, atol=1e-6)

    # Case 2: multi-block tiled path + ragged (masked) last row-block.
    prob = make_simplex(keys[2], (2, 4, 80, 144))    # 92160 elems -> (45, 2048)
    target = make_simplex(keys[3], (2, 4, 80, 144))
    ce = ref_ce(prob, target)
    loss_mean = jax.block_until_ready(
        simplex_cross_entropy_loss(prob, target, "mean", eps, block_rows=32))
    loss_sum = jax.block_until_ready(
        simplex_cross_entropy_loss(prob, target, "sum", eps, block_rows=32))
    loss_none = jax.block_until_ready(
        simplex_cross_entropy_loss(prob, target, "none", eps, block_rows=32))
    assert jnp.allclose(loss_mean, jnp.mean(ce), rtol=1e-4, atol=1e-5)
    assert jnp.allclose(loss_sum, jnp.sum(ce), rtol=1e-4, atol=1e-1)
    assert jnp.allclose(loss_none, ce, rtol=1e-5, atol=1e-6)

    # Case 3: numel not divisible by 128 -> copy-free last-dim-as-lanes path.
    prob = make_simplex(keys[4], (2, 3, 5, 7))
    target = make_simplex(keys[5], (2, 3, 5, 7))
    ce = ref_ce(prob, target)
    loss_mean = jax.block_until_ready(
        simplex_cross_entropy_loss(prob, target, "mean", eps))
    loss_none = jax.block_until_ready(
        simplex_cross_entropy_loss(prob, target, "none", eps))
    assert jnp.allclose(loss_mean, jnp.mean(ce), rtol=1e-5, atol=1e-6)
    assert jnp.allclose(loss_none, ce, rtol=1e-5, atol=1e-6)

    # Case 4: bf16 inputs, upcast to f32 inside the kernel (16-row sublanes).
    prob = make_simplex(keys[6], (2, 4, 16, 16), jnp.bfloat16)
    target = make_simplex(keys[7], (2, 4, 16, 16), jnp.bfloat16)
    loss_sum = jax.block_until_ready(
        simplex_cross_entropy_loss(prob, target, "sum", eps))
    ref_sum = jnp.sum(ref_ce(prob, target))
    assert jnp.allclose(loss_sum.astype(jnp.float32), ref_sum,
                        rtol=2e-2, atol=1e-1)

    print("KERNEL_OK")
</pallas_src>

<mosaic_0001>
module attributes {stable_mosaic.version = 11 : i64} {
  func.func @_ce_psum_kernel(%arg0: i32, %arg1: memref<8x256xf32, #tpu.memory_space<vmem>>, %arg2: memref<8x256xf32, #tpu.memory_space<vmem>>, %arg3: memref<1x8x256xf32, #tpu.memory_space<vmem>>) attributes {dimension_semantics = [#tpu.dimension_semantics<parallel>], iteration_bounds = array<i64: 1>, scalar_prefetch = 0 : i64, scratch_operands = 0 : i64, tpu.core_type = #tpu.core_type<tc>, window_params = [{transform_indices = @transform_0, window_bounds = array<i64: 8, 256>}, {transform_indices = @transform_1, window_bounds = array<i64: 8, 256>}, {transform_indices = @transform_2, window_bounds = array<i64: 1, 8, 256>}]} {
    %c0 = arith.constant 0 : index
    %c0_0 = arith.constant 0 : index
    %0 = vector.load %arg1[%c0, %c0_0] : memref<8x256xf32, #tpu.memory_space<vmem>>, vector<8x256xf32>
    %c0_1 = arith.constant 0 : index
    %c0_2 = arith.constant 0 : index
    %1 = vector.load %arg2[%c0_1, %c0_2] : memref<8x256xf32, #tpu.memory_space<vmem>>, vector<8x256xf32>
    %cst = arith.constant 0.000000e+00 : f32
    %2 = vector.broadcast %cst : f32 to vector<8x256xf32>
    %3 = arith.subf %2, %1 : vector<8x256xf32>
    %cst_3 = arith.constant 1.000000e-16 : f32
    %4 = vector.broadcast %cst_3 : f32 to vector<8x256xf32>
    %5 = arith.addf %0, %4 : vector<8x256xf32>
    %6 = math.log %5 : vector<8x256xf32>
    %7 = arith.mulf %3, %6 : vector<8x256xf32>
    %c0_4 = arith.constant 0 : index
    %c0_5 = arith.constant 0 : index
    %c0_6 = arith.constant 0 : index
    %8 = vector.load %arg3[%c0_4, %c0_5, %c0_6] : memref<1x8x256xf32, #tpu.memory_space<vmem>>, vector<1x8x256xf32>
    %9 = vector.shape_cast %8 : vector<1x8x256xf32> to vector<8x256xf32>
    %10 = vector.shape_cast %7 : vector<8x256xf32> to vector<1x8x256xf32>
    tpu.vector_store %arg3[%c0_4, %c0_5, %c0_6], %10 {strides = array<i32>} : memref<1x8x256xf32, #tpu.memory_space<vmem>>, vector<1x8x256xf32>,
    return
  }
  func.func @transform_0(%arg0: i32) -> (i32, i32) {
    %c0_i32 = arith.constant 0 : i32
    %c0_i32_0 = arith.constant 0 : i32
    return %arg0, %c0_i32 : i32, i32
  }
  func.func @transform_1(%arg0: i32) -> (i32, i32) {
    %c0_i32 = arith.constant 0 : i32
    %c0_i32_0 = arith.constant 0 : i32
    return %arg0, %c0_i32 : i32, i32
  }
  func.func @transform_2(%arg0: i32) -> (i32, i32, i32) {
    %c0_i32 = arith.constant 0 : i32
    %c0_i32_0 = arith.constant 0 : i32
    %c0_i32_1 = arith.constant 0 : i32
    return %arg0, %c0_i32, %c0_i32_0 : i32, i32, i32
  }
}

</mosaic_0001>

<bundles_post_ra>
// kernel: tpu_custom_call.1
= control target key start
LH: loop header
LB: loop body
LE: loop exit
PB: predicated region body
PF: predicated region fallthrough
CT: control target
= control target key end

     0   :  { %7 = vsyncpa [#allocation3], 0  ;;  %s201_s0 = inlined_call_operand.hbm [shape: f32[8,256], index: 0, kind: input, shape index: {}]   ;;  %s202_s1 = inlined_call_operand.hbm [shape: f32[8,256], index: 1, kind: input, shape index: {}]   ;;  %s203_s2 = inlined_call_operand.hbm [shape: f32[1,8,256], index: 2, kind: output, shape index: {}]  }
   0x1   :  { %8 = vsyncpa [#allocation6], 0 }
   0x2   :  { %9 = vsyncpa [#allocation4], 0  ;;  %s147_s9 = smov [#allocation2]   ;;  %s148_s11 = smov [#allocation5]  }
   0x3   :  { %s16_s10 = sshll.u32 %s147_s9, 4  ;;  %s26_s12 = sshll.u32 %s148_s11, 4  ;;  %s17_s10 = int_to_ptr.vmem [resolvable:$true] %s16_s10  ;;  %s27_s12 = int_to_ptr.vmem [resolvable:$true] %s26_s12 }
   0x4   :  { %s75_s15 = scalar_lea.hbm %s201_s0, 256 }
   0x5   :  { %p76_p0 = scmp.ne.s32.totalorder %s201_s0, %s75_s15  ;;  %p79_p1 = scmp.lt.u32.totalorder %s75_s15, %s201_s0 }
   0x7   :  { %p81_p2 = pnand %p79_p1, %p76_p0 }
   0x9   :  { %84 = shalt.err (!%p81_p2)
}
   0xa   :  { %s85_s20 = scalar_lea.vmem %s17_s10, 256  ;;  %p90_p4 = scmp.lt.s32.totalorder %s17_s10, %s17_s10 }
   0xb   :  { %p86_p3 = scmp.ne.s32.totalorder %s17_s10, %s85_s20  ;;  %p91_p5 = scmp.lt.s32.totalorder %s85_s20, %s85_s20 }
   0xd   :  { %p92_p6 = por %p91_p5, %p90_p4 }
   0xf   :  { %p93_p7 = pnand %p92_p6, %p86_p3 }
  0x11   :  { %96 = shalt.err (!%p93_p7)
}
  0x12   :  { %19 = dma.hbm_to_vmem [thread:$0]  %s201_s0, 256, %s17_s10, [#allocation3]  }
  0x13   :  { %s97_s25 = scalar_lea.hbm %s202_s1, 256 }
  0x14   :  { %p98_p8 = scmp.ne.s32.totalorder %s202_s1, %s97_s25  ;;  %p101_p9 = scmp.lt.u32.totalorder %s97_s25, %s202_s1 }
  0x16   :  { %p103_p10 = pnand %p101_p9, %p98_p8 }
  0x18   :  { %106 = shalt.err (!%p103_p10)
}
  0x19   :  { %s107_s30 = scalar_lea.vmem %s27_s12, 256  ;;  %p112_p12 = scmp.lt.s32.totalorder %s27_s12, %s27_s12 }
  0x1a   :  { %p108_p11 = scmp.ne.s32.totalorder %s27_s12, %s107_s30  ;;  %p113_p13 = scmp.lt.s32.totalorder %s107_s30, %s107_s30 }
  0x1c   :  { %p114_p0 = por %p113_p13, %p112_p12 }
  0x1e   :  { %p115_p1 = pnand %p114_p0, %p108_p11 }
  0x20   :  { %118 = shalt.err (!%p115_p1)
}
  0x21   :  { %29 = dma.hbm_to_vmem [thread:$0]  %s202_s1, 256, %s27_s12, [#allocation6]  }
  0x22   :  { %141 = dma.done.wait [#allocation3], 256  }
  0x23   :  { %142 = vsyncadd [#allocation3], 4294967040 }
  0x24   :  { %143 = dma.done.wait [#allocation6], 256  }
  0x25   :  { %144 = vsyncadd [#allocation6], 4294967040  ;;  %v36_v0 = vld [vmem:[#allocation2] sm:$0xff]  ;;  %v37_v1 = vld [vmem:[#allocation2 + $0x8] sm:$0xff]  ;;  %s149_s4 = smov [#allocation7]  }
  0x26   :  { %v42_v2 = vadd.f32 1e-16, %v36_v0  ;;  %v43_v3 = vadd.f32 1e-16, %v37_v1  ;;  %v38_v4 = vld [vmem:[#allocation5] sm:$0xff]  ;;  %v39_v5 = vld [vmem:[#allocation5 + $0x8] sm:$0xff] }
  0x27   :  { %v40_v6 = vsub.f32 0.0, %v38_v4  ;;  %v41_v8 = vsub.f32 0.0, %v39_v5  ;;  %s58_s5 = sshll.u32 %s149_s4, 4  ;;  %s59_s5 = int_to_ptr.vmem [resolvable:$true] %s58_s5 }
  0x28   :  { %71 = vlog2.f32 %v42_v2  ;;  %s119_s1 = scalar_lea.vmem %s59_s5, 256  ;;  %p124_p3 = scmp.lt.s32.totalorder %s59_s5, %s59_s5 }
  0x29   :  { %73 = vlog2.f32 %v43_v3  ;;  %p120_p2 = scmp.ne.s32.totalorder %s59_s5, %s119_s1  ;;  %p125_p4 = scmp.lt.s32.totalorder %s119_s1, %s119_s1 }
  0x2b   :  { %p126_p5 = por %p125_p4, %p124_p3 }
  0x2d   :  { %p127_p6 = pnand %p126_p5, %p120_p2 }
  0x32   :  { %v72_v7 = vpop.eup %71 }
  0x33   :  { %v74_v9 = vpop.eup %73  ;;  %v45_v10 = vmul.f32 0.6931472, %v72_v7 }
  0x34   :  { %v47_v11 = vmul.f32 0.6931472, %v74_v9 }
  0x35   :  { %v48_v12 = vmul.f32 %v45_v10, %v40_v6 }
  0x36   :  { %v49_v13 = vmul.f32 %v47_v11, %v41_v8 }
  0x37   :  { %50 = vst [vmem:[#allocation7] sm:$0xff] %v48_v12 }
  0x38   :  { %51 = vst [vmem:[#allocation7 + $0x8] sm:$0xff] %v49_v13 }
  0x39   :  { %130 = shalt.err (!%p127_p6)
}
  0x3a   :  { %s131_s8 = scalar_lea.hbm %s203_s2, 256 }
  0x3b   :  { %p132_p7 = scmp.ne.s32.totalorder %s203_s2, %s131_s8  ;;  %p135_p8 = scmp.lt.u32.totalorder %s131_s8, %s203_s2 }
  0x3d   :  { %p137_p9 = pnand %p135_p8, %p132_p7 }
  0x3f   :  { %140 = shalt.err (!%p137_p9)
}
  0x40   :  { %61 = dma.vmem_to_hbm [thread:$0]  %s59_s5, 256, %s203_s2, [#allocation4]  }
  0x41   :  { %145 = dma.done.wait [#allocation4], 256  }
  0x42   :  { %146 = vsyncadd [#allocation4], 4294967040 }
  0x43   :  { %65 = vsyncpa [#allocation3], 1 }
  0x44   :  { %66 = vsyncpa [#allocation6], 1 }
  0x45   :  { %67 = vsyncpa [#allocation4], 1 }

</bundles_post_ra>
